<compile_context>
chip_gen: v7x
topology: tpu7x:2x2x1
jax: 0.10.0
libtpu: 0.0.40
codegen_flags: <defaults>
</compile_context>

<pallas_src>
import jax
import jax.numpy as jnp
from jax.experimental import pallas as pl
from jax.experimental.pallas import tpu as pltpu

LANE = 128       # lane width (last dim)
TILE_B = 8       # f32 sublane tile for the batch axis


def _round_up(x, m):
    return (x + m - 1) // m * m


def _pad2(x, rows, cols):
    r, c = x.shape
    return jnp.pad(x, ((0, rows - r), (0, cols - c)))


# ----------------------------- Pallas kernel ------------------------------- #
def clip_fused_kernel(img_ref, txt_ref,
                      wenc_ref, etab_ref,
                      wp_ref, bp_ref,
                      w1_ref, b1_ref,
                      w2_ref, b2_ref,
                      out_ref):
    # Stand-in encoders, fused (no HBM round-trip of the tiny feature vectors).
    img_f = jnp.dot(img_ref[...], wenc_ref[...], preferred_element_type=jnp.float32)
    txt_f = jnp.dot(txt_ref[...], etab_ref[...], preferred_element_type=jnp.float32)

    # torch.cat((image_features, text_features), dim=1)
    feats = jnp.concatenate([img_f, txt_f], axis=-1)

    # emb_proj = relu(proj_layer(features))  -- single dot over the full K dim
    emb = jnp.dot(feats, wp_ref[...], preferred_element_type=jnp.float32) + bp_ref[...]
    emb = jnp.maximum(emb, 0.0)

    # x = relu(fc1(emb_proj))
    h = jnp.dot(emb, w1_ref[...], preferred_element_type=jnp.float32) + b1_ref[...]
    h = jnp.maximum(h, 0.0)

    # dropout_layer: eval-mode semantics (identity).
    # TODO(synk): training-mode dropout would use pltpu.prng_seed +
    #             pltpu.stateful_bernoulli(drop_rate); eval forward is exact.

    # x = fc2(x)   (output lanes padded to 128 -> unmasked, lane-dense store)
    out_ref[...] = jnp.dot(h, w2_ref[...], preferred_element_type=jnp.float32) + b2_ref[...]


# ------------------------------- wrapper ------------------------------------ #
def clip_image_tabular_forward(image_flat, text_oh_mean,
                               w_enc_img, emb_table, params,
                               num_classes, tile_b=TILE_B):
    """Fused stand-in-encoders + head MLP.

    image_flat   : [B, C*H*W]  f32
    text_oh_mean : [B, VOCAB]  f32   (mean one-hot == embedding-mean as matmul)
    """
    B, K_img = image_flat.shape
    V = text_oh_mean.shape[1]
    d_img, d_txt = w_enc_img.shape[1], emb_table.shape[1]
    proj = params["wp_img"].shape[1]
    hidden = params["w1"].shape[1]

    # Lane/sublane-aligned padded dims (zero padding keeps the math exact).
    Kp = _round_up(K_img, LANE)
    Vp = _round_up(V, LANE)
    Dip = _round_up(d_img, LANE)
    Dtp = _round_up(d_txt, LANE)
    Pp = _round_up(proj, LANE)
    Hp = _round_up(hidden, LANE)
    Cp = _round_up(num_classes, LANE)          # lane-dense output
    Bp = _round_up(B, tile_b)

    img = _pad2(image_flat, Bp, Kp)
    toh = _pad2(text_oh_mean, Bp, Vp)
    wenc = _pad2(w_enc_img, Kp, Dip)
    etab = _pad2(emb_table, Vp, Dtp)
    # proj weight laid out to match the in-kernel concat: [img block ; txt block]
    wp = jnp.concatenate([_pad2(params["wp_img"], Dip, Pp),
                          _pad2(params["wp_txt"], Dtp, Pp)], axis=0)
    bp = _pad2(params["bp"], 1, Pp)
    w1 = _pad2(params["w1"], Pp, Hp)
    b1 = _pad2(params["b1"], 1, Hp)
    w2 = _pad2(params["w2"], Hp, Cp)
    b2 = _pad2(params["b2"], 1, Cp)

    operands = (img, toh, wenc, etab, wp, bp, w1, b1, w2, b2)

    flops = 2 * Bp * (Kp * Dip + Vp * Dtp + (Dip + Dtp) * Pp + Pp * Hp + Hp * Cp)
    bytes_accessed = sum(int(x.size) * x.dtype.itemsize for x in operands) + Bp * Cp * 4

    def act_spec(cols):
        # batch-tiled activation: block index advances with the grid
        return pl.BlockSpec((tile_b, cols), lambda i: (i, 0))

    def full_spec(x):
        # weights/biases: full array, constant index_map -> VMEM-resident across grid
        return pl.BlockSpec(x.shape, lambda i: (0, 0))

    out_pad = pl.pallas_call(
        clip_fused_kernel,
        out_shape=jax.ShapeDtypeStruct((Bp, Cp), jnp.float32),
        grid_spec=pltpu.PrefetchScalarGridSpec(
            num_scalar_prefetch=0,
            grid=(Bp // tile_b,),
            in_specs=[
                act_spec(Kp),            # image_flat tile
                act_spec(Vp),            # text one-hot-mean tile
                full_spec(wenc), full_spec(etab),
                full_spec(wp), full_spec(bp),
                full_spec(w1), full_spec(b1),
                full_spec(w2), full_spec(b2),
            ],
            out_specs=pl.BlockSpec((tile_b, Cp), lambda i: (i, 0)),
        ),
        compiler_params=pltpu.CompilerParams(
            dimension_semantics=("parallel",)),      # batch axis -> both TCs on v7x
        cost_estimate=pl.CostEstimate(
            flops=flops, transcendentals=0, bytes_accessed=bytes_accessed),
    )(*operands)

    return out_pad[:B, :num_classes]


# ------------------------------ parameter init ----------------------------- #
def make_params(key, d_img, d_txt, proj_dim, hidden_dim, num_classes):
    """Deterministic synthetic weights.  PyTorch nn.Linear stores W as (out,in)
    and computes x @ W.T + b; here we store the (in,out) transpose directly so
    the kernel does x @ W + b (same math).  The proj weight is split into its
    image/text row blocks (equivalent to slicing the concat-input Linear)."""
    ks = jax.random.split(key, 6)
    scale = 0.05
    return {
        "wp_img": scale * jax.random.normal(ks[0], (d_img, proj_dim), jnp.float32),
        "wp_txt": scale * jax.random.normal(ks[1], (d_txt, proj_dim), jnp.float32),
        "bp":     scale * jax.random.normal(ks[2], (1, proj_dim), jnp.float32),
        "w1":     scale * jax.random.normal(ks[3], (proj_dim, hidden_dim), jnp.float32),
        "b1":     jnp.zeros((1, hidden_dim), jnp.float32),
        "w2":     scale * jax.random.normal(ks[4], (hidden_dim, num_classes), jnp.float32),
        "b2":     jnp.zeros((1, num_classes), jnp.float32),
    }


# --------------------------------- driver ---------------------------------- #
if __name__ == "__main__":
    key = jax.random.PRNGKey(0)
    k_img, k_txt, k_enc_i, k_enc_t, k_params = jax.random.split(key, 5)

    # Small, module-consistent shapes.
    B, C, H, W = 2, 3, 16, 16          # image (NCHW, as PyTorch would feed CLIP)
    L, VOCAB = 8, 50                    # text token ids
    D_IMG, D_TXT = 32, 32               # backbone feature dims (stand-in)
    PROJ_DIM, HIDDEN_DIM, NUM_CLASSES = 32, 32, 4

    image = jax.random.normal(k_img, (B, C, H, W), jnp.float32)
    text = jax.random.randint(k_txt, (B, L), 0, VOCAB, jnp.int32)

    # TODO(synk): real CLIP vision/text towers (open_clip / HF CLIPModel) are
    # external pretrained backbones with no Pallas reimplementation; tiny
    # deterministic stand-in encoders are used, and their matmuls ARE fused
    # into the Pallas kernel.
    w_enc_img = 0.05 * jax.random.normal(k_enc_i, (C * H * W, D_IMG), jnp.float32)
    emb_table = 0.05 * jax.random.normal(k_enc_t, (VOCAB, D_TXT), jnp.float32)

    # Integer index glue only: mean one-hot turns the embedding gather+mean
    # into an in-kernel matmul (onehot_mean @ emb_table == mean(emb_table[text], 1)).
    text_oh_mean = jnp.mean(jax.nn.one_hot(text, VOCAB, dtype=jnp.float32), axis=1)

    params = make_params(k_params, D_IMG, D_TXT, PROJ_DIM, HIDDEN_DIM, NUM_CLASSES)

    image_flat = image.reshape(B, -1)   # NCHW flatten, same as torch .view

    # Pallas fused forward
    logits = clip_image_tabular_forward(image_flat, text_oh_mean,
                                        w_enc_img, emb_table, params, NUM_CLASSES)
    logits = jax.block_until_ready(logits)

    # Pure-JAX reference of the same stand-in forward (concat -> linear -> relu -> ...).
    image_features = image_flat @ w_enc_img
    text_features = jnp.mean(emb_table[text], axis=1)
    feats = jnp.concatenate([image_features, text_features], axis=1)
    wp_ref = jnp.concatenate([params["wp_img"], params["wp_txt"]], axis=0)
    ref = jnp.maximum(feats @ wp_ref + params["bp"], 0.0)
    ref = jnp.maximum(ref @ params["w1"] + params["b1"], 0.0)
    ref = ref @ params["w2"] + params["b2"]

    assert logits.shape == (B, NUM_CLASSES)
    assert jnp.allclose(logits, ref, atol=1e-4, rtol=1e-4), \
        float(jnp.max(jnp.abs(logits - ref)))
    print("KERNEL_OK")
</pallas_src>

<mosaic_0001>
module attributes {stable_mosaic.version = 11 : i64} {
  func.func @clip_fused_kernel(%arg0: i32, %arg1: memref<8x768xf32, #tpu.memory_space<vmem>>, %arg2: memref<8x128xf32, #tpu.memory_space<vmem>>, %arg3: memref<768x128xf32, #tpu.memory_space<vmem>>, %arg4: memref<128x128xf32, #tpu.memory_space<vmem>>, %arg5: memref<256x128xf32, #tpu.memory_space<vmem>>, %arg6: memref<1x128xf32, #tpu.memory_space<vmem>>, %arg7: memref<128x128xf32, #tpu.memory_space<vmem>>, %arg8: memref<1x128xf32, #tpu.memory_space<vmem>>, %arg9: memref<128x128xf32, #tpu.memory_space<vmem>>, %arg10: memref<1x128xf32, #tpu.memory_space<vmem>>, %arg11: memref<8x128xf32, #tpu.memory_space<vmem>>) attributes {dimension_semantics = [#tpu.dimension_semantics<parallel>], iteration_bounds = array<i64: 1>, scalar_prefetch = 0 : i64, scratch_operands = 0 : i64, tpu.core_type = #tpu.core_type<tc>, window_params = [{transform_indices = @transform_0, window_bounds = array<i64: 8, 768>}, {transform_indices = @transform_1, window_bounds = array<i64: 8, 128>}, {pipeline_mode = #tpu.pipeline_mode<synchronous>, transform_indices = @transform_2, window_bounds = array<i64: 768, 128>}, {pipeline_mode = #tpu.pipeline_mode<synchronous>, transform_indices = @transform_3, window_bounds = array<i64: 128, 128>}, {pipeline_mode = #tpu.pipeline_mode<synchronous>, transform_indices = @transform_4, window_bounds = array<i64: 256, 128>}, {pipeline_mode = #tpu.pipeline_mode<synchronous>, transform_indices = @transform_5, window_bounds = array<i64: 1, 128>}, {pipeline_mode = #tpu.pipeline_mode<synchronous>, transform_indices = @transform_6, window_bounds = array<i64: 128, 128>}, {pipeline_mode = #tpu.pipeline_mode<synchronous>, transform_indices = @transform_7, window_bounds = array<i64: 1, 128>}, {pipeline_mode = #tpu.pipeline_mode<synchronous>, transform_indices = @transform_8, window_bounds = array<i64: 128, 128>}, {pipeline_mode = #tpu.pipeline_mode<synchronous>, transform_indices = @transform_9, window_bounds = array<i64: 1, 128>}, {transform_indices = @transform_10, window_bounds = array<i64: 8, 128>}]} {
    %c0 = arith.constant 0 : index
    %c0_0 = arith.constant 0 : index
    %0 = vector.load %arg1[%c0, %c0_0] : memref<8x768xf32, #tpu.memory_space<vmem>>, vector<8x768xf32>
    %c0_1 = arith.constant 0 : index
    %c0_2 = arith.constant 0 : index
    %1 = vector.load %arg3[%c0_1, %c0_2] : memref<768x128xf32, #tpu.memory_space<vmem>>, vector<768x128xf32>
    %cst = arith.constant dense<0.000000e+00> : vector<8x128xf32>
    %2 = tpu.matmul %0, %1, %cst {dimension_numbers = #tpu.dot_dimension_numbers<[1], [0], [0], [1], [0, 0, 1, 1], [], []>} : vector<8x768xf32>, vector<768x128xf32>, vector<8x128xf32> -> vector<8x128xf32>
    %c0_3 = arith.constant 0 : index
    %c0_4 = arith.constant 0 : index
    %3 = vector.load %arg2[%c0_3, %c0_4] : memref<8x128xf32, #tpu.memory_space<vmem>>, vector<8x128xf32>
    %c0_5 = arith.constant 0 : index
    %c0_6 = arith.constant 0 : index
    %4 = vector.load %arg4[%c0_5, %c0_6] : memref<128x128xf32, #tpu.memory_space<vmem>>, vector<128x128xf32>
    %cst_7 = arith.constant dense<0.000000e+00> : vector<8x128xf32>
    %5 = tpu.matmul %3, %4, %cst_7 {dimension_numbers = #tpu.dot_dimension_numbers<[1], [0], [0], [1], [0, 0, 1, 1], [], []>} : vector<8x128xf32>, vector<128x128xf32>, vector<8x128xf32> -> vector<8x128xf32>
    %6 = tpu.concatenate %2, %5 in 1 : vector<8x128xf32>, vector<8x128xf32> -> vector<8x256xf32>
    %c0_8 = arith.constant 0 : index
    %c0_9 = arith.constant 0 : index
    %7 = vector.load %arg5[%c0_8, %c0_9] : memref<256x128xf32, #tpu.memory_space<vmem>>, vector<256x128xf32>
    %cst_10 = arith.constant dense<0.000000e+00> : vector<8x128xf32>
    %8 = tpu.matmul %6, %7, %cst_10 {dimension_numbers = #tpu.dot_dimension_numbers<[1], [0], [0], [1], [0, 0, 1, 1], [], []>} : vector<8x256xf32>, vector<256x128xf32>, vector<8x128xf32> -> vector<8x128xf32>
    %c0_11 = arith.constant 0 : index
    %c0_12 = arith.constant 0 : index
    %9 = vector.load %arg6[%c0_11, %c0_12] : memref<1x128xf32, #tpu.memory_space<vmem>>, vector<1x128xf32>
    %10 = vector.broadcast %9 : vector<1x128xf32> to vector<8x128xf32>
    %11 = arith.addf %8, %10 : vector<8x128xf32>
    %cst_13 = arith.constant 0.000000e+00 : f32
    %12 = vector.broadcast %cst_13 : f32 to vector<8x128xf32>
    %13 = arith.maximumf %11, %12 : vector<8x128xf32>
    %c0_14 = arith.constant 0 : index
    %c0_15 = arith.constant 0 : index
    %14 = vector.load %arg7[%c0_14, %c0_15] : memref<128x128xf32, #tpu.memory_space<vmem>>, vector<128x128xf32>
    %cst_16 = arith.constant dense<0.000000e+00> : vector<8x128xf32>
    %15 = tpu.matmul %13, %14, %cst_16 {dimension_numbers = #tpu.dot_dimension_numbers<[1], [0], [0], [1], [0, 0, 1, 1], [], []>} : vector<8x128xf32>, vector<128x128xf32>, vector<8x128xf32> -> vector<8x128xf32>
    %c0_17 = arith.constant 0 : index
    %c0_18 = arith.constant 0 : index
    %16 = vector.load %arg8[%c0_17, %c0_18] : memref<1x128xf32, #tpu.memory_space<vmem>>, vector<1x128xf32>
    %17 = vector.broadcast %16 : vector<1x128xf32> to vector<8x128xf32>
    %18 = arith.addf %15, %17 : vector<8x128xf32>
    %cst_19 = arith.constant 0.000000e+00 : f32
    %19 = vector.broadcast %cst_19 : f32 to vector<8x128xf32>
    %20 = arith.maximumf %18, %19 : vector<8x128xf32>
    %c0_20 = arith.constant 0 : index
    %c0_21 = arith.constant 0 : index
    %21 = vector.load %arg9[%c0_20, %c0_21] : memref<128x128xf32, #tpu.memory_space<vmem>>, vector<128x128xf32>
    %cst_22 = arith.constant dense<0.000000e+00> : vector<8x128xf32>
    %22 = tpu.matmul %20, %21, %cst_22 {dimension_numbers = #tpu.dot_dimension_numbers<[1], [0], [0], [1], [0, 0, 1, 1], [], []>} : vector<8x128xf32>, vector<128x128xf32>, vector<8x128xf32> -> vector<8x128xf32>
    %c0_23 = arith.constant 0 : index
    %c0_24 = arith.constant 0 : index
    %23 = vector.load %arg10[%c0_23, %c0_24] : memref<1x128xf32, #tpu.memory_space<vmem>>, vector<1x128xf32>
    %24 = vector.broadcast %23 : vector<1x128xf32> to vector<8x128xf32>
    %25 = arith.addf %22, %24 : vector<8x128xf32>
    %c0_25 = arith.constant 0 : index
    %c0_26 = arith.constant 0 : index
    %26 = vector.load %arg11[%c0_25, %c0_26] : memref<8x128xf32, #tpu.memory_space<vmem>>, vector<8x128xf32>
    tpu.vector_store %arg11[%c0_25, %c0_26], %25 {strides = array<i32>} : memref<8x128xf32, #tpu.memory_space<vmem>>, vector<8x128xf32>,
    return
  }
  func.func @transform_0(%arg0: i32) -> (i32, i32) {
    %c0_i32 = arith.constant 0 : i32
    %c0_i32_0 = arith.constant 0 : i32
    return %arg0, %c0_i32 : i32, i32
  }
  func.func @transform_1(%arg0: i32) -> (i32, i32) {
    %c0_i32 = arith.constant 0 : i32
    %c0_i32_0 = arith.constant 0 : i32
    return %arg0, %c0_i32 : i32, i32
  }
  func.func @transform_2(%arg0: i32) -> (i32, i32) {
    %c0_i32 = arith.constant 0 : i32
    %c0_i32_0 = arith.constant 0 : i32
    %c0_i32_1 = arith.constant 0 : i32
    return %c0_i32, %c0_i32_0 : i32, i32
  }
  func.func @transform_3(%arg0: i32) -> (i32, i32) {
    %c0_i32 = arith.constant 0 : i32
    %c0_i32_0 = arith.constant 0 : i32
    %c0_i32_1 = arith.constant 0 : i32
    return %c0_i32, %c0_i32_0 : i32, i32
  }
  func.func @transform_4(%arg0: i32) -> (i32, i32) {
    %c0_i32 = arith.constant 0 : i32
    %c0_i32_0 = arith.constant 0 : i32
    %c0_i32_1 = arith.constant 0 : i32
    return %c0_i32, %c0_i32_0 : i32, i32
  }
  func.func @transform_5(%arg0: i32) -> (i32, i32) {
    %c0_i32 = arith.constant 0 : i32
    %c0_i32_0 = arith.constant 0 : i32
    %c0_i32_1 = arith.constant 0 : i32
    return %c0_i32, %c0_i32_0 : i32, i32
  }
  func.func @transform_6(%arg0: i32) -> (i32, i32) {
    %c0_i32 = arith.constant 0 : i32
    %c0_i32_0 = arith.constant 0 : i32
    %c0_i32_1 = arith.constant 0 : i32
    return %c0_i32, %c0_i32_0 : i32, i32
  }
  func.func @transform_7(%arg0: i32) -> (i32, i32) {
    %c0_i32 = arith.constant 0 : i32
    %c0_i32_0 = arith.constant 0 : i32
    %c0_i32_1 = arith.constant 0 : i32
    return %c0_i32, %c0_i32_0 : i32, i32
  }
  func.func @transform_8(%arg0: i32) -> (i32, i32) {
    %c0_i32 = arith.constant 0 : i32
    %c0_i32_0 = arith.constant 0 : i32
    %c0_i32_1 = arith.constant 0 : i32
    return %c0_i32, %c0_i32_0 : i32, i32
  }
  func.func @transform_9(%arg0: i32) -> (i32, i32) {
    %c0_i32 = arith.constant 0 : i32
    %c0_i32_0 = arith.constant 0 : i32
    %c0_i32_1 = arith.constant 0 : i32
    return %c0_i32, %c0_i32_0 : i32, i32
  }
  func.func @transform_10(%arg0: i32) -> (i32, i32) {
    %c0_i32 = arith.constant 0 : i32
    %c0_i32_0 = arith.constant 0 : i32
    return %arg0, %c0_i32 : i32, i32
  }
}

</mosaic_0001>

<bundles_post_ra>
// kernel: tpu_custom_call.1
= control target key start
LH: loop header
LB: loop body
LE: loop exit
PB: predicated region body
PF: predicated region fallthrough
CT: control target
= control target key end

     0   :  { %15 = vsyncpa [#allocation3], 0  ;;  %s1758_s0 = inlined_call_operand.hbm [shape: f32[8,768], index: 0, kind: input, shape index: {}]   ;;  %s1759_s1 = inlined_call_operand.hbm [shape: f32[8,128], index: 1, kind: input, shape index: {}]   ;;  %s1760_s2 = inlined_call_operand.hbm [shape: f32[768,128], index: 2, kind: input, shape index: {}]   ;;  %s1761_s3 = inlined_call_operand.hbm [shape: f32[128,128], index: 3, kind: input, shape index: {}]   ;;  %s1762_s4 = inlined_call_operand.hbm [shape: f32[256,128], index: 4, kind: input, shape index: {}]   ;;  %s1763_s5 = inlined_call_operand.vmem [shape: f32[1,128], index: 5, kind: input, shape index: {}]   ;;  %s1764_s6 = inlined_call_operand.hbm [shape: f32[128,128], index: 6, kind: input, shape index: {}]   ;;  %s1765_s7 = inlined_call_operand.vmem [shape: f32[1,128], index: 7, kind: input, shape index: {}]   ;;  %s1766_s8 = inlined_call_operand.hbm [shape: f32[128,128], index: 8, kind: input, shape index: {}]   ;;  %s1767_s9 = inlined_call_operand.vmem [shape: f32[1,128], index: 9, kind: input, shape index: {}]   ;;  %s1768_s10 = inlined_call_operand.hbm [shape: f32[8,128], index: 10, kind: output, shape index: {}]  }
   0x1   :  { %16 = vsyncpa [#allocation6], 0 }
   0x2   :  { %17 = vsyncpa [#allocation9], 0 }
   0x3   :  { %18 = vsyncpa [#allocation12], 0 }
   0x4   :  { %19 = vsyncpa [#allocation4], 0  ;;  %s1540_s13 = smov [#allocation5]   ;;  %s1354_s17 = scalar_lea.hbm %s1759_s1, 128 }
   0x5   :  { %s36_s14 = sshll.u32 %s1540_s13, 4  ;;  %p1355_p0 = scmp.ne.s32.totalorder %s1759_s1, %s1354_s17  ;;  %s37_s14 = int_to_ptr.vmem [resolvable:$true] %s36_s14 }
   0x6   :  { %p1358_p1 = scmp.lt.u32.totalorder %s1354_s17, %s1759_s1 }
   0x8   :  { %p1360_p2 = pnand %p1358_p1, %p1355_p0 }
   0xa   :  { %1363 = shalt.err (!%p1360_p2)
}
   0xb   :  { %s1364_s22 = scalar_lea.vmem %s37_s14, 128  ;;  %p1369_p4 = scmp.lt.s32.totalorder %s37_s14, %s37_s14 }
   0xc   :  { %p1365_p3 = scmp.ne.s32.totalorder %s37_s14, %s1364_s22  ;;  %p1370_p5 = scmp.lt.s32.totalorder %s1364_s22, %s1364_s22 }
   0xe   :  { %p1371_p6 = por %p1370_p5, %p1369_p4 }
  0x10   :  { %p1372_p7 = pnand %p1371_p6, %p1365_p3 }
  0x12   :  { %1375 = shalt.err (!%p1372_p7)
}
  0x13   :  { %39 = dma.hbm_to_vmem [thread:$0]  %s1759_s1, 128, %s37_s14, [#allocation6]  }
  0x14   :  { %s1541_s25 = smov [#allocation8]   ;;  %s1542_s27 = smov [#allocation11]  }
  0x15   :  { %s57_s26 = sshll.u32 %s1541_s25, 4  ;;  %s83_s28 = sshll.u32 %s1542_s27, 4  ;;  %s58_s26 = int_to_ptr.vmem [resolvable:$true] %s57_s26  ;;  %s84_s28 = int_to_ptr.vmem [resolvable:$true] %s83_s28 }
  0x16   :  { %s1376_s11 = scalar_lea.hbm %s1761_s3, 2048 }
  0x17   :  { %p1377_p8 = scmp.ne.s32.totalorder %s1761_s3, %s1376_s11  ;;  %p1380_p9 = scmp.lt.u32.totalorder %s1376_s11, %s1761_s3 }
  0x19   :  { %p1382_p10 = pnand %p1380_p9, %p1377_p8 }
  0x1b   :  { %1385 = shalt.err (!%p1382_p10)
}
  0x1c   :  { %s1386_s1 = scalar_lea.vmem %s58_s26, 2048  ;;  %p1391_p12 = scmp.lt.s32.totalorder %s58_s26, %s58_s26 }
  0x1d   :  { %p1387_p11 = scmp.ne.s32.totalorder %s58_s26, %s1386_s1  ;;  %p1392_p13 = scmp.lt.s32.totalorder %s1386_s1, %s1386_s1 }
  0x1f   :  { %p1393_p0 = por %p1392_p13, %p1391_p12 }
  0x21   :  { %p1394_p1 = pnand %p1393_p0, %p1387_p11 }
  0x23   :  { %1397 = shalt.err (!%p1394_p1)
}
  0x24   :  { %s1543_s14 = smov 128   ;;  %s1544_s17 = smov 8  }
  0x25   :  { %63 = dma.hbm_to_vmem [thread:$0]  %s1761_s3, 2048, %s58_s26, [#allocation9], %s1543_s14, %s1543_s14, %s1544_s17  }
  0x26   :  { %s1398_s22 = scalar_lea.hbm %s1764_s6, 2048 }
  0x27   :  { %p1399_p2 = scmp.ne.s32.totalorder %s1764_s6, %s1398_s22  ;;  %p1402_p3 = scmp.lt.u32.totalorder %s1398_s22, %s1764_s6 }
  0x29   :  { %p1404_p4 = pnand %p1402_p3, %p1399_p2 }
  0x2b   :  { %1407 = shalt.err (!%p1404_p4)
}
  0x2c   :  { %s1408_s29 = scalar_lea.vmem %s84_s28, 2048  ;;  %p1413_p6 = scmp.lt.s32.totalorder %s84_s28, %s84_s28 }
  0x2d   :  { %p1409_p5 = scmp.ne.s32.totalorder %s84_s28, %s1408_s29  ;;  %p1414_p7 = scmp.lt.s32.totalorder %s1408_s29, %s1408_s29 }
  0x2f   :  { %p1415_p8 = por %p1414_p7, %p1413_p6 }
  0x31   :  { %p1416_p9 = pnand %p1415_p8, %p1409_p5 }
  0x33   :  { %1419 = shalt.err (!%p1416_p9)
}
  0x34   :  { %89 = dma.hbm_to_vmem [thread:$0]  %s1764_s6, 2048, %s84_s28, [#allocation12], %s1543_s14, %s1543_s14, %s1544_s17  }
  0x35   :  { %s1545_s30 = smov [#allocation2]   ;;  %s1546_s12 = smov [#allocation7]  }
  0x36   :  { %s26_s11 = sshll.u32 %s1545_s30, 4  ;;  %s45_s13 = sshll.u32 %s1546_s12, 4  ;;  %s27_s11 = int_to_ptr.vmem [resolvable:$true] %s26_s11  ;;  %s46_s13 = int_to_ptr.vmem [resolvable:$true] %s45_s13 }
  0x37   :  { %s1420_s1 = scalar_lea.hbm %s1758_s0, 768 }
  0x38   :  { %p1421_p10 = scmp.ne.s32.totalorder %s1758_s0, %s1420_s1  ;;  %p1424_p11 = scmp.lt.u32.totalorder %s1420_s1, %s1758_s0 }
  0x3a   :  { %p1426_p12 = pnand %p1424_p11, %p1421_p10 }
  0x3c   :  { %1429 = shalt.err (!%p1426_p12)
}
  0x3d   :  { %s1430_s6 = scalar_lea.vmem %s27_s11, 768  ;;  %p1435_p0 = scmp.lt.s32.totalorder %s27_s11, %s27_s11 }
  0x3e   :  { %p1431_p13 = scmp.ne.s32.totalorder %s27_s11, %s1430_s6  ;;  %p1436_p1 = scmp.lt.s32.totalorder %s1430_s6, %s1430_s6 }
  0x40   :  { %p1437_p2 = por %p1436_p1, %p1435_p0 }
  0x42   :  { %p1438_p3 = pnand %p1437_p2, %p1431_p13 }
  0x44   :  { %1441 = shalt.err (!%p1438_p3)
}
  0x45   :  { %29 = dma.hbm_to_vmem [thread:$0]  %s1758_s0, 768, %s27_s11, [#allocation3]  }
  0x46   :  { %s1442_s25 = scalar_lea.hbm %s1760_s2, 12288 }
  0x47   :  { %p1443_p4 = scmp.ne.s32.totalorder %s1760_s2, %s1442_s25  ;;  %p1446_p5 = scmp.lt.u32.totalorder %s1442_s25, %s1760_s2 }
  0x49   :  { %p1448_p6 = pnand %p1446_p5, %p1443_p4 }
  0x4b   :  { %1451 = shalt.err (!%p1448_p6)
}
  0x4c   :  { %s1452_s30 = scalar_lea.vmem %s46_s13, 12288  ;;  %p1457_p8 = scmp.lt.s32.totalorder %s46_s13, %s46_s13 }
  0x4d   :  { %p1453_p7 = scmp.ne.s32.totalorder %s46_s13, %s1452_s30  ;;  %p1458_p9 = scmp.lt.s32.totalorder %s1452_s30, %s1452_s30 }
  0x4f   :  { %p1459_p10 = por %p1458_p9, %p1457_p8 }
  0x51   :  { %p1460_p11 = pnand %p1459_p10, %p1453_p7 }
  0x53   :  { %1463 = shalt.err (!%p1460_p11)
}
  0x54   :  { %51 = dma.hbm_to_vmem [thread:$0]  %s1760_s2, 12288, %s46_s13, [#allocation6], %s1543_s14, %s1543_s14, %s1544_s17  }
  0x55   :  { %s1547_s12 = smov [#allocation10]   ;;  %s1548_s16 = smov [#allocation13]  }
  0x56   :  { %s69_s15 = sshll.u32 %s1547_s12, 4  ;;  %s97_s1 = sshll.u32 %s1548_s16, 4  ;;  %s70_s15 = int_to_ptr.vmem [resolvable:$true] %s69_s15  ;;  %s98_s1 = int_to_ptr.vmem [resolvable:$true] %s97_s1 }
  0x57   :  { %s1464_s20 = scalar_lea.hbm %s1762_s4, 4096 }
  0x58   :  { %p1465_p12 = scmp.ne.s32.totalorder %s1762_s4, %s1464_s20  ;;  %p1468_p13 = scmp.lt.u32.totalorder %s1464_s20, %s1762_s4 }
  0x5a   :  { %p1470_p0 = pnand %p1468_p13, %p1465_p12 }
  0x5c   :  { %1473 = shalt.err (!%p1470_p0)
}
  0x5d   :  { %s1474_s2 = scalar_lea.vmem %s70_s15, 4096  ;;  %p1479_p2 = scmp.lt.s32.totalorder %s70_s15, %s70_s15 }
  0x5e   :  { %p1475_p1 = scmp.ne.s32.totalorder %s70_s15, %s1474_s2  ;;  %p1480_p3 = scmp.lt.s32.totalorder %s1474_s2, %s1474_s2 }
  0x60   :  { %p1481_p4 = por %p1480_p3, %p1479_p2 }
  0x62   :  { %p1482_p5 = pnand %p1481_p4, %p1475_p1 }
  0x64   :  { %1485 = shalt.err (!%p1482_p5)
}
  0x65   :  { %75 = dma.hbm_to_vmem [thread:$0]  %s1762_s4, 4096, %s70_s15, [#allocation9], %s1543_s14, %s1543_s14, %s1544_s17  }
  0x66   :  { %s1486_s27 = scalar_lea.hbm %s1766_s8, 2048 }
  0x67   :  { %p1487_p6 = scmp.ne.s32.totalorder %s1766_s8, %s1486_s27  ;;  %p1490_p7 = scmp.lt.u32.totalorder %s1486_s27, %s1766_s8 }
  0x69   :  { %p1492_p8 = pnand %p1490_p7, %p1487_p6 }
  0x6b   :  { %1495 = shalt.err (!%p1492_p8)
}
  0x6c   :  { %s1496_s0 = scalar_lea.vmem %s98_s1, 2048  ;;  %p1501_p10 = scmp.lt.s32.totalorder %s98_s1, %s98_s1 }
  0x6d   :  { %p1497_p9 = scmp.ne.s32.totalorder %s98_s1, %s1496_s0  ;;  %p1502_p11 = scmp.lt.s32.totalorder %s1496_s0, %s1496_s0 }
  0x6f   :  { %p1503_p12 = por %p1502_p11, %p1501_p10 }
  0x71   :  { %p1504_p13 = pnand %p1503_p12, %p1497_p9 }
  0x73   :  { %1507 = shalt.err (!%p1504_p13)
}
  0x74   :  { %103 = dma.hbm_to_vmem [thread:$0]  %s1766_s8, 2048, %s98_s1, [#allocation12], %s1543_s14, %s1543_s14, %s1544_s17  }
  0x75   :  { %1530 = dma.done.wait [#allocation3], 768  }
  0x76   :  { %1531 = vsyncadd [#allocation3], 4294966528 }
  0x77   :  { %1532 = dma.done.wait [#allocation6], 12416  }
  0x78   :  { %1533 = vsyncadd [#allocation6], 4294954880 }
  0x79   :  { %1534 = dma.done.wait [#allocation9], 6144  }
  0x7a   :  { %1535 = vsyncadd [#allocation9], 4294961152 }
  0x7b   :  { %1536 = dma.done.wait [#allocation12], 4096  }
  0x7c   :  { %1537 = vsyncadd [#allocation12], 4294963200  ;;  %v149_v0 = vld [vmem:[#allocation7 + $0x80] sm:$0xff]  ;;  %v150_v1 = vld [vmem:[#allocation7 + $0x88] sm:$0xff]  ;;  %vm1550_vm0 = vmmov 0   ;;  %s1552_s16 = smov [#allocation14]  }
  0x7d   :  { %v181_v2 = vld [vmem:[#allocation7 + $0x180] sm:$0xff]  ;;  %v1141_v3 = vpack.c.bf16 %v150_v1, %v149_v0  ;;  %v182_v4 = vld [vmem:[#allocation7 + $0x188] sm:$0xff]  ;;  %v151_v11 = vld [vmem:[#allocation7 + $0x90] sm:$0xff]  ;;  %s830_s1 = sshll.u32 %s1552_s16, 4  ;;  %s831_s1 = int_to_ptr.vmem [resolvable:$true] %s830_s1 }
  0x7e   :  { %v133_v5 = vld [vmem:[#allocation7] sm:$0xff]  ;;  %v134_v6 = vld [vmem:[#allocation7 + $0x8] sm:$0xff]  ;;  %v1173_v7 = vpack.c.bf16 %v182_v4, %v181_v2  ;;  %v152_v13 = vld [vmem:[#allocation7 + $0x98] sm:$0xff]  ;;  %s1508_s18 = scalar_lea.vmem %s831_s1, 128  ;;  %p1513_p1 = scmp.lt.s32.totalorder %s831_s1, %s831_s1 }
  0x7f   :  { %v1143_v8 = vpack.c.bf16 %v134_v6, %v133_v5  ;;  %v165_v9 = vld [vmem:[#allocation7 + $0x100] sm:$0xff]  ;;  %v166_v10 = vld [vmem:[#allocation7 + $0x108] sm:$0xff]  ;;  %1142 = vmatprep.subr.bf16.mxu0 %v1141_v3  ;;  %v183_v14 = vld [vmem:[#allocation7 + $0x190] sm:$0xff]  ;;  %v1145_v16 = vpack.c.bf16 %v152_v13, %v151_v11  ;;  %p1509_p0 = scmp.ne.s32.totalorder %s831_s1, %s1508_s18  ;;  %p1514_p2 = scmp.lt.s32.totalorder %s1508_s18, %s1508_s18 }
  0x80   :  { %v1175_v12 = vpack.c.bf16 %v166_v10, %v165_v9  ;;  %v184_v15 = vld [vmem:[#allocation7 + $0x198] sm:$0xff]  ;;  %1174 = vmatprep.subr.bf16.mxu1 %v1173_v7  ;;  %v135_v18 = vld [vmem:[#allocation7 + $0x10] sm:$0xff]  ;;  %v153_v23 = vld [vmem:[#allocation7 + $0xa0] sm:$0xff] }
  0x81   :  { %1144 = vmatpush3.bf16.msra.mxu0 %v1143_v8  ;;  %v1177_v17 = vpack.c.bf16 %v184_v15, %v183_v14  ;;  %v136_v19 = vld [vmem:[#allocation7 + $0x18] sm:$0xff]  ;;  %v167_v20 = vld [vmem:[#allocation7 + $0x110] sm:$0xff]  ;;  %v154_v24 = vld [vmem:[#allocation7 + $0xa8] sm:$0xff]  ;;  %p1515_p3 = por %p1514_p2, %p1513_p1 }
  0x82   :  { %1176 = vmatpush3.bf16.msra.mxu1 %v1175_v12  ;;  %v1147_v21 = vpack.c.bf16 %v136_v19, %v135_v18  ;;  %v168_v22 = vld [vmem:[#allocation7 + $0x118] sm:$0xff]  ;;  %1146 = vmatprep.subr.bf16.mxu0 %v1145_v16  ;;  %v1149_v26 = vpack.c.bf16 %v154_v24, %v153_v23  ;;  %v185_v27 = vld [vmem:[#allocation7 + $0x1a0] sm:$0xff]  ;;  %v186_v28 = vld [vmem:[#allocation7 + $0x1a8] sm:$0xff] }
  0x83   :  { %1178 = vmatprep.subr.bf16.mxu1 %v1177_v17  ;;  %v1179_v25 = vpack.c.bf16 %v168_v22, %v167_v20  ;;  %v137_v29 = vld [vmem:[#allocation7 + $0x20] sm:$0xff]  ;;  %v1181_v30 = vpack.c.bf16 %v186_v28, %v185_v27  ;;  %v138_v31 = vld [vmem:[#allocation7 + $0x28] sm:$0xff]  ;;  %v155_v35 = vld [vmem:[#allocation7 + $0xb0] sm:$0xff]  ;;  %p1516_p4 = pnand %p1515_p3, %p1509_p0 }
  0x84   :  { %v169_v32 = vld [vmem:[#allocation7 + $0x120] sm:$0xff]  ;;  %v170_v33 = vld [vmem:[#allocation7 + $0x128] sm:$0xff]  ;;  %v1151_v34 = vpack.c.bf16 %v138_v31, %v137_v29  ;;  %v156_v36 = vld [vmem:[#allocation7 + $0xb8] sm:$0xff] }
  0x85   :  { %1148 = vmatpush3.bf16.msra.mxu0 %v1147_v21  ;;  %v187_v37 = vld [vmem:[#allocation7 + $0x1b0] sm:$0xff]  ;;  %v1183_v38 = vpack.c.bf16 %v170_v33, %v169_v32  ;;  %v1153_v39 = vpack.c.bf16 %v156_v36, %v155_v35  ;;  %v188_v40 = vld [vmem:[#allocation7 + $0x1b8] sm:$0xff]  ;;  %v157_v46 = vld [vmem:[#allocation7 + $0xc0] sm:$0xff] }
  0x86   :  { %1180 = vmatpush3.bf16.msra.mxu1 %v1179_v25  ;;  %1150 = vmatprep.subr.bf16.mxu0 %v1149_v26  ;;  %v139_v41 = vld [vmem:[#allocation7 + $0x30] sm:$0xff]  ;;  %v140_v42 = vld [vmem:[#allocation7 + $0x38] sm:$0xff]  ;;  %v1185_v43 = vpack.c.bf16 %v188_v40, %v187_v37  ;;  %v158_v47 = vld [vmem:[#allocation7 + $0xc8] sm:$0xff] }
  0x87   :  { %1182 = vmatprep.subr.bf16.mxu1 %v1181_v30  ;;  %v171_v44 = vld [vmem:[#allocation7 + $0x130] sm:$0xff]  ;;  %v172_v45 = vld [vmem:[#allocation7 + $0x138] sm:$0xff]  ;;  %v189_v48 = vld [vmem:[#allocation7 + $0x1c0] sm:$0xff]  ;;  %v1155_v50 = vpack.c.bf16 %v140_v42, %v139_v41  ;;  %v1157_v52 = vpack.c.bf16 %v158_v47, %v157_v46 }
  0x88   :  { %v190_v49 = vld [vmem:[#allocation7 + $0x1c8] sm:$0xff]  ;;  %v1187_v51 = vpack.c.bf16 %v172_v45, %v171_v44  ;;  %v141_v53 = vld [vmem:[#allocation7 + $0x40] sm:$0xff]  ;;  %v159_v58 = vld [vmem:[#allocation7 + $0xd0] sm:$0xff] }
  0x89   :  { %1152 = vmatpush3.bf16.msra.mxu0 %v1151_v34  ;;  %v142_v54 = vld [vmem:[#allocation7 + $0x48] sm:$0xff]  ;;  %v173_v55 = vld [vmem:[#allocation7 + $0x140] sm:$0xff]  ;;  %v1189_v56 = vpack.c.bf16 %v190_v49, %v189_v48  ;;  %v160_v59 = vld [vmem:[#allocation7 + $0xd8] sm:$0xff] }
  0x8a   :  { %1184 = vmatpush3.bf16.msra.mxu1 %v1183_v38  ;;  %1154 = vmatprep.subr.bf16.mxu0 %v1153_v39  ;;  %v174_v57 = vld [vmem:[#allocation7 + $0x148] sm:$0xff]  ;;  %v191_v60 = vld [vmem:[#allocation7 + $0x1d0] sm:$0xff]  ;;  %v192_v61 = vld [vmem:[#allocation7 + $0x1d8] sm:$0xff]  ;;  %v1159_v62 = vpack.c.bf16 %v142_v54, %v141_v53  ;;  %v1161_v0 = vpack.c.bf16 %v160_v59, %v159_v58 }
  0x8b   :  { %1186 = vmatprep.subr.bf16.mxu1 %v1185_v43  ;;  %v1191_v63 = vpack.c.bf16 %v174_v57, %v173_v55  ;;  %v143_v1 = vld [vmem:[#allocation7 + $0x50] sm:$0xff]  ;;  %v144_v2 = vld [vmem:[#allocation7 + $0x58] sm:$0xff]  ;;  %v1193_v4 = vpack.c.bf16 %v192_v61, %v191_v60  ;;  %v161_v6 = vld [vmem:[#allocation7 + $0xe0] sm:$0xff] }
  0x8c   :  { %v175_v3 = vld [vmem:[#allocation7 + $0x150] sm:$0xff]  ;;  %v176_v5 = vld [vmem:[#allocation7 + $0x158] sm:$0xff]  ;;  %v162_v7 = vld [vmem:[#allocation7 + $0xe8] sm:$0xff]  ;;  %v1163_v10 = vpack.c.bf16 %v144_v2, %v143_v1  ;;  %v1551_v1 = vmov 0.0  }
  0x8d   :  { %1156 = vmatpush3.bf16.msra.mxu0 %v1155_v50  ;;  %v193_v8 = vld [vmem:[#allocation7 + $0x1e0] sm:$0xff]  ;;  %v194_v9 = vld [vmem:[#allocation7 + $0x1e8] sm:$0xff]  ;;  %v1195_v13 = vpack.c.bf16 %v176_v5, %v175_v3  ;;  %v1165_v14 = vpack.c.bf16 %v162_v7, %v161_v6  ;;  %v128_v16 = vld [vmem:[#allocation2 + $0x8] sm:$0xff] }
  0x8e   :  { %1188 = vmatpush3.bf16.msra.mxu1 %v1187_v51  ;;  %1158 = vmatprep.subr.bf16.mxu0 %v1157_v52  ;;  %v145_v11 = vld [vmem:[#allocation7 + $0x60] sm:$0xff]  ;;  %v146_v12 = vld [vmem:[#allocation7 + $0x68] sm:$0xff]  ;;  %v1197_v18 = vpack.c.bf16 %v194_v9, %v193_v8  ;;  %v163_v20 = vld [vmem:[#allocation7 + $0xf0] sm:$0xff]  ;;  %v1549_v51 = vmov 0.0|0.0  }
  0x8f   :  { %1190 = vmatprep.subr.bf16.mxu1 %v1189_v56  ;;  %v177_v15 = vld [vmem:[#allocation7 + $0x160] sm:$0xff]  ;;  %v178_v19 = vld [vmem:[#allocation7 + $0x168] sm:$0xff]  ;;  %v164_v21 = vld [vmem:[#allocation7 + $0xf8] sm:$0xff]  ;;  %293 = vmatprep.mubr.f32.mxu0 %v128_v16  ;;  %v1167_v24 = vpack.c.bf16 %v146_v12, %v145_v11 }
  0x90   :  { %v130_v17 = vld [vmem:[#allocation2 + $0x18] sm:$0xff]  ;;  %v195_v22 = vld [vmem:[#allocation7 + $0x1f0] sm:$0xff]  ;;  %v196_v23 = vld [vmem:[#allocation7 + $0x1f8] sm:$0xff]  ;;  %v1199_v25 = vpack.c.bf16 %v178_v19, %v177_v15  ;;  %v1169_v26 = vpack.c.bf16 %v164_v21, %v163_v20 }
  0x91   :  { %1160 = vmatpush3.bf16.msra.mxu0 %v1159_v62  ;;  %363 = vmatprep.mubr.f32.mxu1 %v130_v17  ;;  %v147_v27 = vld [vmem:[#allocation7 + $0x70] sm:$0xff]  ;;  %v148_v28 = vld [vmem:[#allocation7 + $0x78] sm:$0xff]  ;;  %v1201_v30 = vpack.c.bf16 %v196_v23, %v195_v22  ;;  %v213_v32 = vld [vmem:[#allocation7 + $0x280] sm:$0xff] }
  0x92   :  { %1192 = vmatpush3.bf16.msra.mxu1 %v1191_v63  ;;  %1162 = vmatprep.subr.bf16.mxu0 %v1161_v0  ;;  %v179_v29 = vld [vmem:[#allocation7 + $0x170] sm:$0xff]  ;;  %v180_v31 = vld [vmem:[#allocation7 + $0x178] sm:$0xff]  ;;  %v214_v33 = vld [vmem:[#allocation7 + $0x288] sm:$0xff]  ;;  %v1171_v34 = vpack.c.bf16 %v148_v28, %v147_v27 }
  0x93   :  { %1194 = vmatprep.subr.bf16.mxu1 %v1193_v4  ;;  %v1203_v35 = vpack.c.bf16 %v180_v31, %v179_v29  ;;  %v1205_v36 = vpack.c.bf16 %v214_v33, %v213_v32  ;;  %v197_v37 = vld [vmem:[#allocation7 + $0x200] sm:$0xff]  ;;  %v198_v38 = vld [vmem:[#allocation7 + $0x208] sm:$0xff]  ;;  %v215_v39 = vld [vmem:[#allocation7 + $0x290] sm:$0xff] }
  0x94   :  { %v216_v40 = vld [vmem:[#allocation7 + $0x298] sm:$0xff]  ;;  %v440_v41 = vld [vmem:[#allocation8] sm:$0xff]  ;;  %v441_v42 = vld [vmem:[#allocation8 + $0x8] sm:$0xff]  ;;  %v1207_v45 = vpack.c.bf16 %v198_v38, %v197_v37 }
  0x95   :  { %1164 = vmatpush3.bf16.msra.mxu0 %v1163_v10  ;;  %v127_v43 = vld [vmem:[#allocation2] sm:$0xff]  ;;  %v129_v44 = vld [vmem:[#allocation2 + $0x10] sm:$0xff]  ;;  %v1209_v46 = vpack.c.bf16 %v216_v40, %v215_v39  ;;  %v1238_v47 = vpack.c.bf16 %v441_v42, %v440_v41  ;;  %v199_v48 = vld [vmem:[#allocation7 + $0x210] sm:$0xff] }
  0x96   :  { %1196 = vmatpush3.bf16.msra.mxu1 %v1195_v13  ;;  %1166 = vmatprep.subr.bf16.mxu0 %v1165_v14  ;;  %v200_v49 = vld [vmem:[#allocation7 + $0x218] sm:$0xff]  ;;  %v217_v50 = vld [vmem:[#allocation7 + $0x2a0] sm:$0xff]  ;;  %v218_v52 = vld [vmem:[#allocation7 + $0x2a8] sm:$0xff] }
  0x97   :  { %1198 = vmatprep.subr.bf16.mxu1 %v1197_v18  ;;  %v442_v53 = vld [vmem:[#allocation8 + $0x10] sm:$0xff]  ;;  %v443_v54 = vld [vmem:[#allocation8 + $0x18] sm:$0xff]  ;;  %v1211_v55 = vpack.c.bf16 %v200_v49, %v199_v48  ;;  %v201_v56 = vld [vmem:[#allocation7 + $0x220] sm:$0xff]  ;;  %v1213_v57 = vpack.c.bf16 %v218_v52, %v217_v50 }
  0x98   :  { %v1241_v58 = vpack.c.bf16 %v443_v54, %v442_v53  ;;  %v202_v59 = vld [vmem:[#allocation7 + $0x228] sm:$0xff]  ;;  %v219_v60 = vld [vmem:[#allocation7 + $0x2b0] sm:$0xff]  ;;  %v220_v61 = vld [vmem:[#allocation7 + $0x2b8] sm:$0xff] }
  0x99   :  { %1168 = vmatpush3.bf16.msra.mxu0 %v1167_v24  ;;  %v444_v62 = vld [vmem:[#allocation8 + $0x20] sm:$0xff]  ;;  %v445_v63 = vld [vmem:[#allocation8 + $0x28] sm:$0xff]  ;;  %v132_v0 = vld [vmem:[#allocation2 + $0x28] sm:$0xff]  ;;  %v1215_v2 = vpack.c.bf16 %v202_v59, %v201_v56  ;;  %v1217_v3 = vpack.c.bf16 %v220_v61, %v219_v60 }
  0x9a   :  { %1200 = vmatpush3.bf16.msra.mxu1 %v1199_v25  ;;  %1170 = vmatprep.subr.bf16.mxu0 %v1169_v26  ;;  %v1244_v4 = vpack.c.bf16 %v445_v63, %v444_v62  ;;  %v203_v5 = vld [vmem:[#allocation7 + $0x230] sm:$0xff]  ;;  %v204_v6 = vld [vmem:[#allocation7 + $0x238] sm:$0xff]  ;;  %v221_v7 = vld [vmem:[#allocation7 + $0x2c0] sm:$0xff] }
  0x9b   :  { %1202 = vmatprep.subr.bf16.mxu1 %v1201_v30  ;;  %v222_v8 = vld [vmem:[#allocation7 + $0x2c8] sm:$0xff]  ;;  %v446_v9 = vld [vmem:[#allocation8 + $0x30] sm:$0xff]  ;;  %v447_v10 = vld [vmem:[#allocation8 + $0x38] sm:$0xff]  ;;  %v1219_v11 = vpack.c.bf16 %v204_v6, %v203_v5 }
  0x9c   :  { %v1221_v12 = vpack.c.bf16 %v222_v8, %v221_v7  ;;  %v1247_v13 = vpack.c.bf16 %v447_v10, %v446_v9  ;;  %v205_v14 = vld [vmem:[#allocation7 + $0x240] sm:$0xff]  ;;  %v206_v15 = vld [vmem:[#allocation7 + $0x248] sm:$0xff]  ;;  %v223_v16 = vld [vmem:[#allocation7 + $0x2d0] sm:$0xff] }
  0x9d   :  { %1172 = vmatpush3.bf16.msra.mxu0 %v1171_v34  ;;  %v224_v17 = vld [vmem:[#allocation7 + $0x2d8] sm:$0xff]  ;;  %v448_v18 = vld [vmem:[#allocation8 + $0x40] sm:$0xff]  ;;  %v449_v19 = vld [vmem:[#allocation8 + $0x48] sm:$0xff]  ;;  %v1223_v20 = vpack.c.bf16 %v206_v15, %v205_v14 }
  0x9e   :  { %1204 = vmatpush3.bf16.msra.mxu1 %v1203_v35  ;;  %1206 = vmatprep.subr.bf16.mxu0 %v1205_v36  ;;  %v1225_v21 = vpack.c.bf16 %v224_v17, %v223_v16  ;;  %v1250_v22 = vpack.c.bf16 %v449_v19, %v448_v18  ;;  %v207_v23 = vld [vmem:[#allocation7 + $0x250] sm:$0xff]  ;;  %v208_v24 = vld [vmem:[#allocation7 + $0x258] sm:$0xff]  ;;  %v225_v25 = vld [vmem:[#allocation7 + $0x2e0] sm:$0xff] }
  0x9f   :  { %1237 = vmatprep.subr.bf16.mxu1 %v1549_v51  ;;  %v226_v26 = vld [vmem:[#allocation7 + $0x2e8] sm:$0xff]  ;;  %v450_v27 = vld [vmem:[#allocation8 + $0x50] sm:$0xff]  ;;  %v451_v28 = vld [vmem:[#allocation8 + $0x58] sm:$0xff]  ;;  %v1227_v29 = vpack.c.bf16 %v208_v24, %v207_v23 }
  0xa0   :  { %294 = vmatmul.mubr.f32.vlgmr.msra.gmra.mrb[0].mxu0 %v127_v43  ;;  %v1229_v30 = vpack.c.bf16 %v226_v26, %v225_v25  ;;  %v1253_v31 = vpack.c.bf16 %v451_v28, %v450_v27  ;;  %v209_v32 = vld [vmem:[#allocation7 + $0x260] sm:$0xff]  ;;  %v210_v33 = vld [vmem:[#allocation7 + $0x268] sm:$0xff]  ;;  %v227_v34 = vld [vmem:[#allocation7 + $0x2f0] sm:$0xff] }
  0xa1   :  { %364 = vmatmul.mubr.f32.vlgmr.msra.gmra.mrb[0].mxu1 %v129_v44  ;;  %1208 = vmatpush3.bf16.msra.mxu0 %v1207_v45  ;;  %v228_v35 = vld [vmem:[#allocation7 + $0x2f8] sm:$0xff]  ;;  %v452_v36 = vld [vmem:[#allocation8 + $0x60] sm:$0xff]  ;;  %v453_v37 = vld [vmem:[#allocation8 + $0x68] sm:$0xff]  ;;  %v1231_v38 = vpack.c.bf16 %v210_v33, %v209_v32 }
  0xa2   :  { %1210 = vmatprep.subr.bf16.mxu0 %v1209_v46  ;;  %1239 = vmatpush3.bf16.msra.mxu1 %v1238_v47  ;;  %v1233_v39 = vpack.c.bf16 %v228_v35, %v227_v34  ;;  %v1256_v40 = vpack.c.bf16 %v453_v37, %v452_v36  ;;  %v211_v41 = vld [vmem:[#allocation7 + $0x270] sm:$0xff]  ;;  %v212_v42 = vld [vmem:[#allocation7 + $0x278] sm:$0xff]  ;;  %v131_v47 = vld [vmem:[#allocation2 + $0x20] sm:$0xff] }
  0xa3   :  { %1240 = vmatprep.subr.bf16.mxu1 %v1549_v51  ;;  %1068 = vmatprep.mubr.msk.f32.mxu1 %vm1550_vm0, %v1551_v1  ;;  %v454_v43 = vld [vmem:[#allocation8 + $0x70] sm:$0xff]  ;;  %v455_v44 = vld [vmem:[#allocation8 + $0x78] sm:$0xff]  ;;  %v1235_v45 = vpack.c.bf16 %v212_v42, %v211_v41  ;;  %v542_v49 = vld [vmem:[#allocation10 + $0x80] sm:$0xff] }
  0xa4   :  { %433 = vmatprep.mubr.f32.mxu0 %v132_v0  ;;  %v1259_v46 = vpack.c.bf16 %v455_v44, %v454_v43  ;;  %v439_v48 = vld [vmem:[#allocation5] sm:$0xff]  ;;  %v543_v50 = vld [vmem:[#allocation10 + $0x88] sm:$0xff]  ;;  %v526_v53 = vld [vmem:[#allocation10] sm:$0xff] }
  0xa5   :  { %1212 = vmatpush3.bf16.msra.mxu0 %v1211_v55  ;;  %v1261_v52 = vpack.c.bf16 %v543_v50, %v542_v49  ;;  %v527_v54 = vld [vmem:[#allocation10 + $0x8] sm:$0xff]  ;;  %v544_v55 = vld [vmem:[#allocation10 + $0x90] sm:$0xff]  ;;  %v529_v59 = vld [vmem:[#allocation10 + $0x18] sm:$0xff] }
  0xa6   :  { %1214 = vmatprep.subr.bf16.mxu0 %v1213_v57  ;;  %1242 = vmatpush3.bf16.msra.mxu1 %v1241_v58  ;;  %v1263_v56 = vpack.c.bf16 %v527_v54, %v526_v53  ;;  %v545_v57 = vld [vmem:[#allocation10 + $0x98] sm:$0xff]  ;;  %v528_v58 = vld [vmem:[#allocation10 + $0x10] sm:$0xff]  ;;  %v546_v61 = vld [vmem:[#allocation10 + $0xa0] sm:$0xff] }
  0xa7   :  { %1243 = vmatprep.subr.bf16.mxu1 %v1549_v51  ;;  %v1265_v60 = vpack.c.bf16 %v545_v57, %v544_v55  ;;  %v547_v62 = vld [vmem:[#allocation10 + $0xa8] sm:$0xff]  ;;  %v1267_v63 = vpack.c.bf16 %v529_v59, %v528_v58  ;;  %v549_v5 = vld [vmem:[#allocation10 + $0xb8] sm:$0xff]  ;;  %v532_v8 = vld [vmem:[#allocation10 + $0x30] sm:$0xff] }
  0xa8   :  { %v1269_v0 = vpack.c.bf16 %v547_v62, %v546_v61  ;;  %v533_v9 = vld [vmem:[#allocation10 + $0x38] sm:$0xff]  ;;  %v550_v10 = vld [vmem:[#allocation10 + $0xc0] sm:$0xff]  ;;  %v535_v15 = vld [vmem:[#allocation10 + $0x48] sm:$0xff] }
  0xa9   :  { %1216 = vmatpush3.bf16.msra.mxu0 %v1215_v2  ;;  %v530_v2 = vld [vmem:[#allocation10 + $0x20] sm:$0xff]  ;;  %v552_v16 = vld [vmem:[#allocation10 + $0xd0] sm:$0xff]  ;;  %v553_v17 = vld [vmem:[#allocation10 + $0xd8] sm:$0xff] }
  0xaa   :  { %1218 = vmatprep.subr.bf16.mxu0 %v1217_v3  ;;  %1245 = vmatpush3.bf16.msra.mxu1 %v1244_v4  ;;  %v531_v3 = vld [vmem:[#allocation10 + $0x28] sm:$0xff]  ;;  %v548_v4 = vld [vmem:[#allocation10 + $0xb0] sm:$0xff]  ;;  %v534_v14 = vld [vmem:[#allocation10 + $0x40] sm:$0xff]  ;;  %v1281_v19 = vpack.c.bf16 %v553_v17, %v552_v16 }
  0xab   :  { %1246 = vmatprep.subr.bf16.mxu1 %v1549_v51  ;;  %v1271_v6 = vpack.c.bf16 %v531_v3, %v530_v2  ;;  %v1273_v7 = vpack.c.bf16 %v549_v5, %v548_v4  ;;  %v1279_v18 = vpack.c.bf16 %v535_v15, %v534_v14  ;;  %v555_v23 = vld [vmem:[#allocation10 + $0xe8] sm:$0xff]  ;;  %v538_v26 = vld [vmem:[#allocation10 + $0x60] sm:$0xff]  ;;  %v540_v32 = vld [vmem:[#allocation10 + $0x70] sm:$0xff] }
  0xac   :  { %v539_v27 = vld [vmem:[#allocation10 + $0x68] sm:$0xff]  ;;  %v541_v33 = vld [vmem:[#allocation10 + $0x78] sm:$0xff]  ;;  %v636_v35 = vld [vmem:[#allocation11] sm:$0xff] }
  0xad   :  { %1220 = vmatpush3.bf16.msra.mxu0 %v1219_v11  ;;  %v551_v11 = vld [vmem:[#allocation10 + $0xc8] sm:$0xff]  ;;  %v1287_v28 = vpack.c.bf16 %v539_v27, %v538_v26  ;;  %v1291_v34 = vpack.c.bf16 %v541_v33, %v540_v32  ;;  %v638_v37 = vld [vmem:[#allocation11 + $0x10] sm:$0xff]  ;;  %v640_v41 = vld [vmem:[#allocation11 + $0x20] sm:$0xff] }
  0xae   :  { %1222 = vmatprep.subr.bf16.mxu0 %v1221_v12  ;;  %1248 = vmatpush3.bf16.msra.mxu1 %v1247_v13  ;;  %v1275_v12 = vpack.c.bf16 %v533_v9, %v532_v8  ;;  %v1277_v13 = vpack.c.bf16 %v551_v11, %v550_v10  ;;  %v637_v36 = vld [vmem:[#allocation11 + $0x8] sm:$0xff]  ;;  %v642_v44 = vld [vmem:[#allocation11 + $0x30] sm:$0xff]  ;;  %v648_v4 = vld [vmem:[#allocation11 + $0x60] sm:$0xff] }
  0xaf   :  { %1249 = vmatprep.subr.bf16.mxu1 %v1549_v51  ;;  %v641_v42 = vld [vmem:[#allocation11 + $0x28] sm:$0xff]  ;;  %v646_v50 = vld [vmem:[#allocation11 + $0x50] sm:$0xff]  ;;  %v651_v8 = vld [vmem:[#allocation11 + $0x78] sm:$0xff] }
  0xb0   :  { %v1300_v43 = vpack.c.bf16 %v641_v42, %v640_v41  ;;  %v649_v5 = vld [vmem:[#allocation11 + $0x68] sm:$0xff]  ;;  %v730_v10 = vld [vmem:[#allocation13] sm:$0xff]  ;;  %v733_v14 = vld [vmem:[#allocation13 + $0x18] sm:$0xff] }
  0xb1   :  { %1224 = vmatpush3.bf16.msra.mxu0 %v1223_v20  ;;  %v536_v20 = vld [vmem:[#allocation10 + $0x50] sm:$0xff]  ;;  %v731_v11 = vld [vmem:[#allocation13 + $0x8] sm:$0xff]  ;;  %v742_v27 = vld [vmem:[#allocation13 + $0x60] sm:$0xff] }
  0xb2   :  { %1226 = vmatprep.subr.bf16.mxu0 %v1225_v21  ;;  %1251 = vmatpush3.bf16.msra.mxu1 %v1250_v22  ;;  %v537_v21 = vld [vmem:[#allocation10 + $0x58] sm:$0xff]  ;;  %v554_v22 = vld [vmem:[#allocation10 + $0xe0] sm:$0xff]  ;;  %v735_v16 = vld [vmem:[#allocation13 + $0x28] sm:$0xff] }
  0xb3   :  { %1252 = vmatprep.subr.bf16.mxu1 %v1549_v51  ;;  %v1283_v24 = vpack.c.bf16 %v537_v21, %v536_v20  ;;  %v1285_v25 = vpack.c.bf16 %v555_v23, %v554_v22  ;;  %v738_v21 = vld [vmem:[#allocation13 + $0x40] sm:$0xff]  ;;  %v739_v22 = vld [vmem:[#allocation13 + $0x48] sm:$0xff] }
  0xb4   :  { %v1330_v23 = vpack.c.bf16 %v739_v22, %v738_v21 }
  0xb5   :  { %1228 = vmatpush3.bf16.msra.mxu0 %v1227_v29  ;;  %v556_v29 = vld [vmem:[#allocation10 + $0xf0] sm:$0xff] }
  0xb6   :  { %1230 = vmatprep.subr.bf16.mxu0 %v1229_v30  ;;  %1254 = vmatpush3.bf16.msra.mxu1 %v1253_v31  ;;  %v557_v30 = vld [vmem:[#allocation10 + $0xf8] sm:$0xff] }
  0xb7   :  { %1255 = vmatprep.subr.bf16.mxu1 %v1549_v51  ;;  %v1289_v31 = vpack.c.bf16 %v557_v30, %v556_v29 }
  0xb9   :  { %1232 = vmatpush3.bf16.msra.mxu0 %v1231_v38  ;;  %v1294_v38 = vpack.c.bf16 %v637_v36, %v636_v35  ;;  %v744_v36 = vld [vmem:[#allocation13 + $0x70] sm:$0xff] }
  0xba   :  { %1234 = vmatprep.subr.bf16.mxu0 %v1233_v39  ;;  %1257 = vmatpush3.bf16.msra.mxu1 %v1256_v40  ;;  %v639_v39 = vld [vmem:[#allocation11 + $0x18] sm:$0xff] }
  0xbb   :  { %1258 = vmatprep.subr.bf16.mxu1 %v1549_v51  ;;  %v1297_v40 = vpack.c.bf16 %v639_v39, %v638_v37  ;;  %v745_v37 = vld [vmem:[#allocation13 + $0x78] sm:$0xff]  ;;  %v843_v39 = vld [vmem:[%s1765_s7] ss:$0 sm:$0xff] }
  0xbd   :  { %1236 = vmatpush3.bf16.msra.mxu0 %v1235_v45  ;;  %v643_v45 = vld [vmem:[#allocation11 + $0x38] sm:$0xff] }
  0xbe   :  { %1260 = vmatpush3.bf16.msra.mxu1 %v1259_v46  ;;  %1262 = vmatprep.subr.bf16.mxu0 %v1261_v52  ;;  %v1303_v46 = vpack.c.bf16 %v643_v45, %v642_v44  ;;  %v647_v52 = vld [vmem:[#allocation11 + $0x58] sm:$0xff] }
  0xbf   :  { %1293 = vmatprep.subr.bf16.mxu1 %v1549_v51  ;;  %v1309_v53 = vpack.c.bf16 %v647_v52, %v646_v50 }
  0xc0   :  { %434 = vmatmul.mubr.f32.vlgmr.msra.gmra.mrb[2].mxu0 %v131_v47  ;;  %v644_v47 = vld [vmem:[#allocation11 + $0x40] sm:$0xff] }
  0xc1   :  { %1069 = vmatmul.mubr.f32.vlgmr.msra.gmra.mrb[2].mxu1 %v439_v48  ;;  %1264 = vmatpush3.bf16.msra.mxu0 %v1263_v56  ;;  %v645_v48 = vld [vmem:[#allocation11 + $0x48] sm:$0xff] }
  0xc2   :  { %1103 = vmatprep.mubr.msk.f32.mxu1 %vm1550_vm0, %v1551_v1  ;;  %1266 = vmatprep.subr.bf16.mxu0 %v1265_v60  ;;  %v1306_v49 = vpack.c.bf16 %v645_v48, %v644_v47 }
  0xc3   :  { %1295 = vmatpush3.bf16.msra.mxu1 %v1294_v38  ;;  %v1339_v38 = vpack.c.bf16 %v745_v37, %v744_v36 }
  0xc4   :  { %1296 = vmatprep.subr.bf16.mxu1 %v1549_v51 }
  0xc5   :  { %1268 = vmatpush3.bf16.msra.mxu0 %v1267_v63 }
  0xc6   :  { %1270 = vmatprep.subr.bf16.mxu0 %v1269_v0 }
  0xc7   :  { %1298 = vmatpush3.bf16.msra.mxu1 %v1297_v40 }
  0xc8   :  { %1299 = vmatprep.subr.bf16.mxu1 %v1549_v51 }
  0xc9   :  { %1272 = vmatpush3.bf16.msra.mxu0 %v1271_v6  ;;  %v1312_v6 = vpack.c.bf16 %v649_v5, %v648_v4 }
  0xca   :  { %1274 = vmatprep.subr.bf16.mxu0 %v1273_v7  ;;  %v650_v7 = vld [vmem:[#allocation11 + $0x70] sm:$0xff] }
  0xcb   :  { %1301 = vmatpush3.bf16.msra.mxu1 %v1300_v43  ;;  %v1315_v9 = vpack.c.bf16 %v651_v8, %v650_v7  ;;  %v844_v43 = vld [vmem:[%s1767_s9] ss:$0 sm:$0xff] }
  0xcc   :  { %1302 = vmatprep.subr.bf16.mxu1 %v1549_v51 }
  0xcd   :  { %1276 = vmatpush3.bf16.msra.mxu0 %v1275_v12  ;;  %v732_v12 = vld [vmem:[#allocation13 + $0x10] sm:$0xff] }
  0xce   :  { %1278 = vmatprep.subr.bf16.mxu0 %v1277_v13  ;;  %v1318_v13 = vpack.c.bf16 %v731_v11, %v730_v10  ;;  %v1321_v15 = vpack.c.bf16 %v733_v14, %v732_v12 }
  0xcf   :  { %1304 = vmatpush3.bf16.msra.mxu1 %v1303_v46 }
  0xd0   :  { %1305 = vmatprep.subr.bf16.mxu1 %v1549_v51 }
  0xd1   :  { %1280 = vmatpush3.bf16.msra.mxu0 %v1279_v18  ;;  %v736_v18 = vld [vmem:[#allocation13 + $0x30] sm:$0xff] }
  0xd2   :  { %1282 = vmatprep.subr.bf16.mxu0 %v1281_v19  ;;  %v737_v19 = vld [vmem:[#allocation13 + $0x38] sm:$0xff] }
  0xd3   :  { %1307 = vmatpush3.bf16.msra.mxu1 %v1306_v49  ;;  %v1327_v20 = vpack.c.bf16 %v737_v19, %v736_v18 }
  0xd4   :  { %1308 = vmatprep.subr.bf16.mxu1 %v1549_v51 }
  0xd5   :  { %1284 = vmatpush3.bf16.msra.mxu0 %v1283_v24  ;;  %v740_v24 = vld [vmem:[#allocation13 + $0x50] sm:$0xff] }
  0xd6   :  { %1286 = vmatprep.subr.bf16.mxu0 %v1285_v25  ;;  %v741_v25 = vld [vmem:[#allocation13 + $0x58] sm:$0xff] }
  0xd7   :  { %1310 = vmatpush3.bf16.msra.mxu1 %v1309_v53  ;;  %v1333_v26 = vpack.c.bf16 %v741_v25, %v740_v24 }
  0xd8   :  { %1311 = vmatprep.subr.bf16.mxu1 %v1549_v51 }
  0xd9   :  { %1288 = vmatpush3.bf16.msra.mxu0 %v1287_v28  ;;  %v743_v28 = vld [vmem:[#allocation13 + $0x68] sm:$0xff] }
  0xda   :  { %1290 = vmatprep.subr.bf16.mxu0 %v1289_v31  ;;  %v1336_v29 = vpack.c.bf16 %v743_v28, %v742_v27  ;;  %v842_v31 = vld [vmem:[%s1763_s5] ss:$0 sm:$0xff] }
  0xdb   :  { %1313 = vmatpush3.bf16.msra.mxu1 %v1312_v6 }
  0xdc   :  { %1314 = vmatprep.subr.bf16.mxu1 %v1549_v51 }
  0xdd   :  { %1292 = vmatpush3.bf16.msra.mxu0 %v1291_v34 }
  0xde   :  { %1317 = vmatprep.subr.bf16.mxu0 %v1549_v51 }
  0xdf   :  { %1316 = vmatpush3.bf16.msra.mxu1 %v1315_v9 }
 0x173   :  { %v877_v54 = vpop.f32.mrb[0].mxu0 }
 0x174   :  { %v912_v55 = vpop.f32.mrb[0].mxu1  ;;  %v878_v56 = vpop.f32.mrb[1].mxu0 }
 0x175   :  { %v879_v57 = vadd.f32 %v878_v56, %v877_v54  ;;  %v913_v58 = vpop.f32.mrb[1].mxu1 }
 0x176   :  { %v914_v59 = vadd.f32 %v913_v58, %v912_v55 }
 0x178   :  { %v366_v60 = vadd.f32 %v914_v59, %v879_v57 }
 0x193   :  { %v947_v61 = vpop.f32.mrb[2].mxu0 }
 0x194   :  { %v948_v62 = vpop.f32.mrb[3].mxu0  ;;  %v522_v63 = vpop.f32.mrb[2].mxu1 }
 0x195   :  { %v949_v0 = vadd.f32 %v948_v62, %v947_v61  ;;  %v1070_v2 = vpop.f32.mrb[3].mxu1  ;;  %629 = vmatprep.mubr.f32.mxu0 %v522_v63 }
 0x197   :  { %v436_v3 = vadd.f32 %v949_v0, %v366_v60 }
 0x199   :  { %630 = vmatmul.mubr.f32.vlgmr.msra.gmra.mrb[4].mxu0 %v436_v3 }
 0x19a   :  { %1138 = vmatprep.mubr.msk.f32.mxu0 %vm1550_vm0, %v1551_v1  ;;  %1319 = vmatpush3.bf16.msra.mxu0 %v1318_v13  ;;  %v734_v1 = vld [vmem:[#allocation13 + $0x20] sm:$0xff] }
 0x19b   :  { %1320 = vmatprep.subr.bf16.mxu0 %v1549_v51  ;;  %v1324_v17 = vpack.c.bf16 %v735_v16, %v734_v1 }
 0x19e   :  { %1322 = vmatpush3.bf16.msra.mxu0 %v1321_v15 }
 0x19f   :  { %1323 = vmatprep.subr.bf16.mxu0 %v1549_v51 }
 0x1a2   :  { %1325 = vmatpush3.bf16.msra.mxu0 %v1324_v17 }
 0x1a3   :  { %1326 = vmatprep.subr.bf16.mxu0 %v1549_v51 }
 0x1a6   :  { %1328 = vmatpush3.bf16.msra.mxu0 %v1327_v20 }
 0x1a7   :  { %1329 = vmatprep.subr.bf16.mxu0 %v1549_v51 }
 0x1aa   :  { %1331 = vmatpush3.bf16.msra.mxu0 %v1330_v23 }
 0x1ab   :  { %1332 = vmatprep.subr.bf16.mxu0 %v1549_v51 }
 0x1ae   :  { %1334 = vmatpush3.bf16.msra.mxu0 %v1333_v26 }
 0x1af   :  { %1335 = vmatprep.subr.bf16.mxu0 %v1549_v51 }
 0x1b2   :  { %1337 = vmatpush3.bf16.msra.mxu0 %v1336_v29 }
 0x1b3   :  { %1338 = vmatprep.subr.bf16.mxu0 %v1549_v51 }
 0x1b6   :  { %1340 = vmatpush3.bf16.msra.mxu0 %v1339_v38 }
 0x26c   :  { %v999_v30 = vpop.f32.mrb[4].mxu0 }
 0x26d   :  { %v1000_v32 = vpop.f32.mrb[5].mxu0 }
 0x26e   :  { %v1001_v33 = vadd.f32 %v1000_v32, %v999_v30 }
 0x270   :  { %v632_v34 = vadd.f32 %v1001_v33, %v842_v31 }
 0x272   :  { %v635_v35 = vmax.f32 %v632_v34, 0.0 }
 0x274   :  { %1104 = vmatmul.mubr.f32.vlgmr.msra.gmra.mrb[4].mxu1 %v635_v35 }
 0x347   :  { %v725_v40 = vpop.f32.mrb[4].mxu1 }
 0x348   :  { %v726_v51 = vadd.f32 %v843_v39, %v725_v40  ;;  %v1105_v41 = vpop.f32.mrb[5].mxu1 }
 0x34a   :  { %v729_v42 = vmax.f32 %v726_v51, 0.0 }
 0x34c   :  { %1139 = vmatmul.mubr.f32.vlgmr.msra.gmra.mrb[6].mxu0 %v729_v42 }
 0x41f   :  { %v819_v44 = vpop.f32.mrb[6].mxu0 }
 0x420   :  { %v820_v45 = vadd.f32 %v844_v43, %v819_v44  ;;  %v1140_v46 = vpop.f32.mrb[7].mxu0 }
 0x422   :  { %823 = vst [vmem:[#allocation14] sm:$0xff] %v820_v45 }
 0x423   :  { %1519 = shalt.err (!%p1516_p4)
}
 0x424   :  { %s1520_s20 = scalar_lea.hbm %s1768_s10, 128 }
 0x425   :  { %p1521_p5 = scmp.ne.s32.totalorder %s1768_s10, %s1520_s20  ;;  %p1524_p6 = scmp.lt.u32.totalorder %s1520_s20, %s1768_s10 }
 0x427   :  { %p1526_p7 = pnand %p1524_p6, %p1521_p5 }
 0x429   :  { %1529 = shalt.err (!%p1526_p7)
}
 0x42a   :  { %833 = dma.vmem_to_hbm [thread:$0]  %s831_s1, 128, %s1768_s10, [#allocation4]  }
 0x42b   :  { %1538 = dma.done.wait [#allocation4], 128  }
 0x42c   :  { %1539 = vsyncadd [#allocation4], 4294967168 }
 0x42d   :  { %837 = vsyncpa [#allocation3], 1 }
 0x42e   :  { %838 = vsyncpa [#allocation6], 1 }
 0x42f   :  { %839 = vsyncpa [#allocation9], 1 }
 0x430   :  { %840 = vsyncpa [#allocation12], 1 }
 0x431   :  { %841 = vsyncpa [#allocation4], 1 }

</bundles_post_ra>
